<compile_context>
chip_gen: v5e
topology: v5e:2x2
jax: 0.10.0
libtpu: 0.0.40
codegen_flags: <defaults>
</compile_context>

<pallas_src>
import functools

import jax
import jax.numpy as jnp
from jax import lax
from jax.experimental import pallas as pl
from jax.experimental.pallas import tpu as pltpu

# ----------------------------- configuration ---------------------------------
B, C, H, W = 2, 4, 16, 16          # batch, coils, spatial
HW = H * W
HID = 32                           # hidden channels of the synthetic denoiser
GAMMA = 0.5                        # config['method']['deq_cal']['gamma']
ALPHA = 0.4                        # config['method']['deq_cal']['alpha']
SIGMA = 5.0 / 255.0                # config['method']['deq_cal']['warmup']['x_sigma'] / 255


# ------------------- pltpu.roll rotation-convention probe --------------------
def _probe_roll_convention():
    """True if pltpu.roll(x, s)[i] == x[(i - s) % n] (numpy/jnp.roll convention).

    Probed at the lane width actually used by the kernel (B*HW = 512).
    """
    def _k(x_ref, o_ref):
        o_ref[...] = pltpu.roll(x_ref[...], 1, axis=1)

    probe_in = jnp.broadcast_to(jnp.arange(B * HW, dtype=jnp.float32), (8, B * HW))
    out = pl.pallas_call(
        _k, out_shape=jax.ShapeDtypeStruct((8, B * HW), jnp.float32))(probe_in)
    return float(out[0, 1]) == 0.0


# ------------------------------ fused kernel ----------------------------------
def make_fused_kernel(gamma, alpha, sigma, batch, n_coils, h, w, roll_numpy):
    hw = h * w
    bc = batch * n_coils
    bhw = batch * hw
    hid = HID
    f32 = jnp.float32
    bf16 = jnp.bfloat16

    def shift_lanes(a, off):
        # shifted[..., L] = a[..., L + off]   (wrap-around is masked by the caller)
        if off == 0:
            return a
        n = a.shape[-1]
        s = (-off) % n if roll_numpy else off % n
        return pltpu.roll(a, s, axis=1)

    def kernel(d_ref, g_ref, w_ref, o_ref):
        # ---------------- unpack the packed slabs (all slices 8-row aligned) ----
        d = d_ref[...]                                  # [7*BC, HW] f32
        sr = d[0 * bc:1 * bc, :]                        # coil maps (real / imag)
        si = d[1 * bc:2 * bc, :]
        yr = d[2 * bc:3 * bc, :]                        # measured k-space
        yi = d[3 * bc:4 * bc, :]
        xr8 = d[4 * bc:5 * bc, :]                       # x replicated per coil
        xi8 = d[5 * bc:6 * bc, :]
        m8 = d[6 * bc:7 * bc, :]                        # mask replicated per coil
        g = g_ref[...]                                  # [HW, 2*HW] bf16 = [gr | gi]
        wmat = w_ref[...]                               # [HID+18, HID+1] bf16

        # ---------------- data consistency: dc = A^H (A x - y) ------------------
        # coil images z = smps * x
        zr = sr * xr8 - si * xi8
        zi = sr * xi8 + si * xr8
        # orthonormal fft2 of all coil planes: ONE wide bf16 dot [2BC,HW]@[HW,2HW]
        z2 = jnp.concatenate([zr, zi], axis=0).astype(bf16)
        f1 = jnp.dot(z2, g, preferred_element_type=f32)            # [2BC, 2HW]
        kr = f1[0:bc, 0:hw] - f1[bc:2 * bc, hw:2 * hw]
        ki = f1[0:bc, hw:2 * hw] + f1[bc:2 * bc, 0:hw]
        # masked residual (mask applied by fmult, then again by ftran)
        rr = m8 * (m8 * kr - yr)
        ri = m8 * (m8 * ki - yi)
        # orthonormal ifft2 = R @ conj(G): second wide bf16 dot
        r2 = jnp.concatenate([rr, ri], axis=0).astype(bf16)
        f2 = jnp.dot(r2, g, preferred_element_type=f32)
        wr = f2[0:bc, 0:hw] + f2[bc:2 * bc, hw:2 * hw]
        wi = f2[bc:2 * bc, 0:hw] - f2[0:bc, hw:2 * hw]
        # conj(smps) * ifft result
        ur = sr * wr + si * wi
        ui = sr * wi - si * wr

        # coil combine on the (idle) MXU: dc[b] = sum_c u[b*C+c]
        row_i = lax.broadcasted_iota(jnp.int32, (batch, bc), 0)
        col_i = lax.broadcasted_iota(jnp.int32, (batch, bc), 1)
        sel = (col_i // n_coils == row_i).astype(f32)               # [B, B*C]
        dccat = jnp.dot(sel, jnp.concatenate([ur, ui], axis=1),
                        preferred_element_type=f32)                 # [B, 2*HW]

        # x2 = x - gamma*dc, assembled directly in lane-stacked [1, B*HW] form
        x2r_ls = jnp.concatenate(
            [xr8[b * n_coils:b * n_coils + 1, :] - gamma * dccat[b:b + 1, 0:hw]
             for b in range(batch)], axis=1)
        x2i_ls = jnp.concatenate(
            [xi8[b * n_coils:b * n_coils + 1, :] - gamma * dccat[b:b + 1, hw:2 * hw]
             for b in range(batch)], axis=1)

        # ---------------- CNN prior (both images lane-stacked on B*HW lanes) ----
        lane = lax.broadcasted_iota(jnp.int32, (1, bhw), 1)
        pix = lane % hw
        col = pix % w
        row = pix // w
        offsets, valids = [], []
        for di in (-1, 0, 1):
            for dj in (-1, 0, 1):                 # tap order matches OIHW (kh, kw)
                offsets.append(di * w + dj)
                valids.append((row + di >= 0) & (row + di < h) &
                              (col + dj >= 0) & (col + dj < w))
        ones_row = jnp.ones((1, bhw), f32)

        # layer 1: shift-input im2col (3 rows/tap), bias via constant-1 row, one dot
        a0 = jnp.concatenate([x2r_ls, x2i_ls, jnp.full((1, bhw), sigma, f32)], axis=0)
        taps = [jnp.where(v, shift_lanes(a0, off), 0.0)
                for off, v in zip(offsets, valids)]
        t_mat = jnp.concatenate(taps + [ones_row], axis=0).astype(bf16)   # [28, B*HW]
        w1 = wmat[0:hid, 0:28]                                            # [HID, 28]
        h1 = jnp.maximum(jnp.dot(w1, t_mat, preferred_element_type=f32), 0.0)

        # layer 2: shift-output accumulation (9 tiny dots, rolls on 2-row results)
        h1b = jnp.concatenate([h1, ones_row], axis=0).astype(bf16)        # [HID+1, B*HW]
        acc = jnp.zeros((2, bhw), f32)
        for t, (off, v) in enumerate(zip(offsets, valids)):
            w2t = wmat[hid + 2 * t:hid + 2 * (t + 1), :]                  # [2, HID+1]
            yt = jnp.dot(w2t, h1b, preferred_element_type=f32)            # [2, B*HW]
            acc = acc + jnp.where(v, shift_lanes(yt, off), 0.0)

        # ---------------- convex combination; one lane-dense [2, B*HW] store ----
        x2_ls = jnp.concatenate([x2r_ls, x2i_ls], axis=0)                 # [2, B*HW]
        o_ref[...] = alpha * acc + (1.0 - alpha) * x2_ls

    return kernel


# ------------------------------- JAX wrapper ----------------------------------
def _dft_matrix(n):
    k = jnp.arange(n, dtype=jnp.float32)
    ang = -2.0 * jnp.pi * jnp.outer(k, k) / n
    scale = 1.0 / jnp.sqrt(jnp.float32(n))
    return jnp.cos(ang) * scale, jnp.sin(ang) * scale


def deep_unfolding_forward(x, y, smps, mask, w1_oihw, b1, w2_oihw, b2, *,
                           roll_numpy=True):
    b, h, w = x.shape
    c = smps.shape[1]
    hw = h * w
    bc = b * c
    bhw = b * hw

    # --- constants (glue): orthonormal 2-D DFT as one pre-concatenated bf16 slab ----
    fhr, fhi = _dft_matrix(h)
    fwr, fwi = _dft_matrix(w)
    gr = jnp.kron(fhr, fwr) - jnp.kron(fhi, fwi)
    gi = jnp.kron(fhr, fwi) + jnp.kron(fhi, fwr)
    g_cat = jnp.concatenate([gr, gi], axis=1).astype(jnp.bfloat16)    # [HW, 2*HW]

    # --- CNN weights packed into one bf16 slab, biases folded via constant-1 rows ---
    # layer 1: [HID, 27] im2col columns (tap-major, channel-minor) + bias column
    w1_cols = jnp.transpose(w1_oihw, (0, 2, 3, 1)).reshape(HID, 27)
    w1_mat = jnp.concatenate(
        [w1_cols, b1[:, None], jnp.zeros((HID, (HID + 1) - 28), jnp.float32)], axis=1)
    # layer 2: per-tap [2, HID] blocks + bias column (b2 on the center tap only)
    w2_rows = []
    for kh in range(3):
        for kw in range(3):
            tap = w2_oihw[:, :, kh, kw]                               # [2, HID]
            bias_col = b2[:, None] if (kh == 1 and kw == 1) else jnp.zeros((2, 1), jnp.float32)
            w2_rows.append(jnp.concatenate([tap, bias_col], axis=1))  # [2, HID+1]
    w_slab = jnp.concatenate([w1_mat] + w2_rows, axis=0).astype(jnp.bfloat16)  # [HID+18, HID+1]

    # --- f32 data slab: smps / y / (coil-replicated x, mask), pixels on lanes -------
    xr = jnp.real(x).reshape(b, hw).astype(jnp.float32)
    xi = jnp.imag(x).reshape(b, hw).astype(jnp.float32)
    sr = jnp.real(smps).reshape(bc, hw).astype(jnp.float32)
    si = jnp.imag(smps).reshape(bc, hw).astype(jnp.float32)
    yr = jnp.real(y).reshape(bc, hw).astype(jnp.float32)
    yi = jnp.imag(y).reshape(bc, hw).astype(jnp.float32)
    mr = mask.reshape(b, hw).astype(jnp.float32)
    data = jnp.concatenate(
        [sr, si, yr, yi,
         jnp.repeat(xr, c, axis=0), jnp.repeat(xi, c, axis=0), jnp.repeat(mr, c, axis=0)],
        axis=0)                                                       # [7*BC, HW]

    vmem = pl.BlockSpec(memory_space=pltpu.MemorySpace.VMEM)
    kernel = make_fused_kernel(GAMMA, ALPHA, SIGMA, b, c, h, w, roll_numpy)
    out = pl.pallas_call(
        kernel,
        out_shape=jax.ShapeDtypeStruct((2, bhw), jnp.float32),
        in_specs=[vmem, vmem, vmem],
        out_specs=vmem,
    )(data, g_cat, w_slab)

    return (out[0] + 1j * out[1]).reshape(b, h, w)


# ------------------------- pure-JAX reference (checking) ----------------------
def reference_forward(x, y, smps, mask, w1_oihw, b1, w2_oihw, b2):
    fm = jnp.fft.fft2(x[:, None, :, :] * smps, norm='ortho') * mask[:, None, :, :]
    resid = fm - y
    dc = jnp.sum(jnp.conj(smps) * jnp.fft.ifft2(resid * mask[:, None, :, :], norm='ortho'),
                 axis=1)
    x2 = x - GAMMA * dc
    nin = jnp.stack([jnp.real(x2), jnp.imag(x2),
                     jnp.full_like(jnp.real(x2), SIGMA)], axis=1)  # [B,3,H,W]

    def conv(z, wgt, bia):
        o = lax.conv_general_dilated(z, wgt, (1, 1), ((1, 1), (1, 1)),
                                     dimension_numbers=('NCHW', 'OIHW', 'NCHW'))
        return o + bia[None, :, None, None]

    hid = jnp.maximum(conv(nin, w1_oihw, b1), 0.0)
    out = conv(hid, w2_oihw, b2)
    prior = out[:, 0] + 1j * out[:, 1]
    return ALPHA * prior + (1.0 - ALPHA) * x2


# ----------------------------------- main -------------------------------------
if __name__ == "__main__":
    keys = jax.random.split(jax.random.PRNGKey(0), 12)

    x = ((jax.random.normal(keys[0], (B, H, W))
          + 1j * jax.random.normal(keys[1], (B, H, W))) / jnp.sqrt(2.0)).astype(jnp.complex64)
    smps_raw = (jax.random.normal(keys[2], (B, C, H, W))
                + 1j * jax.random.normal(keys[3], (B, C, H, W))).astype(jnp.complex64)
    smps = smps_raw / jnp.sqrt(jnp.sum(jnp.abs(smps_raw) ** 2, axis=1, keepdims=True))
    y = (0.5 * (jax.random.normal(keys[4], (B, C, H, W))
                + 1j * jax.random.normal(keys[5], (B, C, H, W)))).astype(jnp.complex64)
    mask = (jax.random.uniform(keys[6], (B, H, W)) < 0.5).astype(jnp.float32)

    # deterministic synthetic denoiser parameters (PyTorch OIHW convention)
    w1_oihw = 0.1 * jax.random.normal(keys[7], (HID, 3, 3, 3), jnp.float32)
    b1 = 0.01 * jax.random.normal(keys[8], (HID,), jnp.float32)
    w2_oihw = 0.1 * jax.random.normal(keys[9], (2, HID, 3, 3), jnp.float32)
    b2 = 0.01 * jax.random.normal(keys[10], (2,), jnp.float32)

    roll_numpy = _probe_roll_convention()
    fwd = jax.jit(functools.partial(deep_unfolding_forward, roll_numpy=roll_numpy))
    x_hat = fwd(x, y, smps, mask, w1_oihw, b1, w2_oihw, b2)
    jax.block_until_ready(x_hat)

    x_ref = reference_forward(x, y, smps, mask, w1_oihw, b1, w2_oihw, b2)
    err = float(jnp.max(jnp.abs(x_hat - x_ref)))
    if err > 5e-2:
        raise AssertionError(f"kernel/reference mismatch, max abs err = {err}")

    print("KERNEL_OK")
</pallas_src>

<mosaic_0001>
module attributes {stable_mosaic.version = 11 : i64} {
  func.func @_k(%arg0: memref<8x512xf32, #tpu.memory_space<vmem>>, %arg1: memref<8x512xf32, #tpu.memory_space<vmem>>) attributes {dimension_semantics = [], scalar_prefetch = 0 : i64, scratch_operands = 0 : i64, tpu.core_type = #tpu.core_type<tc>} {
    %c0 = arith.constant 0 : index
    %c0_0 = arith.constant 0 : index
    %0 = vector.load %arg0[%c0, %c0_0] : memref<8x512xf32, #tpu.memory_space<vmem>>, vector<8x512xf32>
    %c1_i32 = arith.constant 1 : i32
    %1 = tpu.dynamic_rotate %0 by %c1_i32 dim 1 : vector<8x512xf32>, i32 -> vector<8x512xf32>
    %c0_1 = arith.constant 0 : index
    %c0_2 = arith.constant 0 : index
    %2 = vector.load %arg1[%c0_1, %c0_2] : memref<8x512xf32, #tpu.memory_space<vmem>>, vector<8x512xf32>
    tpu.vector_store %arg1[%c0_1, %c0_2], %1 {strides = array<i32>} : memref<8x512xf32, #tpu.memory_space<vmem>>, vector<8x512xf32>,
    return
  }
}

</mosaic_0001>

<bundles_post_ra>
// kernel: tpu_custom_call.1
= control target key start
LH: loop header
LB: loop body
LE: loop exit
PB: predicated region body
PF: predicated region fallthrough
CT: control target
= control target key end

     0   :  { %6 = vsyncpa [#allocation3], 0  ;;  %s137_s0 = inlined_call_operand.hbm [shape: f32[8,512], index: 0, kind: input, shape index: {}]   ;;  %s138_s1 = inlined_call_operand.hbm [shape: f32[8,512], index: 1, kind: output, shape index: {}]  }
   0x1   :  { %7 = vsyncpa [#allocation4], 0  ;;  %s13_s8 = sshll.u32 %s137_s0, 4  ;;  %s118_s9 = smov [#allocation2]   ;;  %s14_s8 = int_to_ptr.hbm [resolvable:$true] %s13_s8 }
   0x2   :  { %s15_s10 = sshll.u32 %s118_s9, 4  ;;  %s16_s10 = int_to_ptr.vmem [resolvable:$true] %s15_s10 }
   0x3   :  { %18 = dma.hbm_to_vmem [thread:$0]  %s14_s8, 512, %s16_s10, [#allocation3]  }
   0x4   :  { %114 = dma.done.wait [#allocation3], 512  }
   0x5   :  { %115 = vsyncadd [#allocation3], 4294966784  ;;  %v25_v0 = vld [vmem:[#allocation2 + $0x10] sm:$0xff]  ;;  %v23_v1 = vld [vmem:[#allocation2] sm:$0xff]  ;;  %s119_s11 = smov 1   ;;  %v35_v4 = vlaneseq  ;;  %s120_s0 = smov [#allocation5]  }
   0x6   :  { %31 = vrot.lane.b32.xlu1 %v25_v0, %s119_s11  ;;  %27 = vrot.lane.b32.xlu0 %v23_v1, %s119_s11  ;;  %v26_v2 = vld [vmem:[#allocation2 + $0x18] sm:$0xff]  ;;  %v24_v3 = vld [vmem:[#allocation2 + $0x8] sm:$0xff]  ;;  %s51_s12 = sshll.u32 %s120_s0, 4  ;;  %s53_s15 = sshll.u32 %s138_s1, 4  ;;  %s52_s12 = int_to_ptr.vmem [resolvable:$true] %s51_s12  ;;  %s54_s15 = int_to_ptr.hbm [resolvable:$true] %s53_s15 }
   0x7   :  { %v36_v7 = vand.u32 127, %v35_v4 }
   0x9   :  { %vm37_vm0 = vcmp.lt.s32.totalorder %v36_v7, 1 }
   0xe   :  { %33 = vrot.lane.b32.xlu1 %v26_v2, %s119_s11  ;;  %29 = vrot.lane.b32.xlu0 %v24_v3, %s119_s11 }
  0x78   :  { %v32_v5 = vpop.permute.xlu1 %31  ;;  %v28_v6 = vpop.permute.xlu0 %27 }
  0x80   :  { %v34_v8 = vpop.permute.xlu1 %33  ;;  %v30_v9 = vpop.permute.xlu0 %29 }
  0x81   :  { %v38_v10 = vsel %vm37_vm0, %v32_v5, %v34_v8  ;;  %v41_v11 = vsel %vm37_vm0, %v34_v8, %v28_v6  ;;  %v40_v12 = vsel %vm37_vm0, %v28_v6, %v30_v9  ;;  %v39_v13 = vsel %vm37_vm0, %v30_v9, %v32_v5 }
  0x82   :  { %42 = vst [vmem:[#allocation5] sm:$0xff] %v41_v11 }
  0x83   :  { %45 = vst [vmem:[#allocation5 + $0x18] sm:$0xff] %v38_v10 }
  0x84   :  { %43 = vst [vmem:[#allocation5 + $0x8] sm:$0xff] %v40_v12 }
  0x85   :  { %44 = vst [vmem:[#allocation5 + $0x10] sm:$0xff] %v39_v13 }
  0x86   :  { %56 = dma.vmem_to_hbm [thread:$0]  %s52_s12, 512, %s54_s15, [#allocation4]  }
  0x87   :  { %116 = dma.done.wait [#allocation4], 512  }
  0x88   :  { %117 = vsyncadd [#allocation4], 4294966784 }
  0x89   :  { %61 = vsyncpa [#allocation3], 1 }
  0x8a   :  { %62 = vsyncpa [#allocation4], 1 }

</bundles_post_ra>
